<compile_context>
chip_gen: v7x
topology: tpu7x:2x2x1
jax: 0.10.0
libtpu: 0.0.40
codegen_flags: <defaults>
</compile_context>

<pallas_src>
import jax
import jax.numpy as jnp
from jax.experimental import pallas as pl
from jax.experimental.pallas import tpu as pltpu


def _make_kernel(H, W, Wp, P, C_in, tap_shifts, data_off):
    """Per-image kernel body.

    tap_shifts: static flat-index shift (Python int) of each (dilation, kh, kw)
      tap window inside the zero-padded, row-major (width Wp) flattened image.
    data_off: flat index of original pixel (0, 0) inside that buffer.
    """
    HW = H * W
    HWp = H * Wp

    def kernel(x_ref, w_ref, b_ref, o_ref, xflat_ref, patch_ref):
        # x_ref:     (1, C_in, H*W)        lane-dense raw image (NCHW, flattened)
        # w_ref:     (C_outc, K)           stacked weights, K = n_taps*C_in
        # b_ref:     (C_outc, 1)           summed per-dilation biases
        # o_ref:     (1, C_out, H*W)       fused [x, conv-sum] output
        # xflat_ref: (C_in, LF)            zero-padded flattened image scratch
        # patch_ref: (K, H*Wp)             im2col patch matrix scratch
        x = x_ref[0]                                            # (C_in, HW)

        # 1) Fused zero padding: zero the flat buffer, then drop each image row
        #    in at row stride Wp (pure static lane-offset stores, no relayout).
        xflat_ref[...] = jnp.zeros_like(xflat_ref)
        for h in range(H):
            dst = data_off + h * Wp
            xflat_ref[:, dst:dst + W] = x[:, h * W:(h + 1) * W]

        # 2) im2col: each tap window is a static lane-shifted slice of the flat
        #    buffer -> one (C_in, H*Wp) copy per tap into the patch matrix.
        for t, s in enumerate(tap_shifts):
            patch_ref[t * C_in:(t + 1) * C_in, :] = xflat_ref[:, s:s + HWp]

        # 3) One fused matmul over K = n_dil*k*k*C_in (f32 accumulation),
        #    bias add hoisted outside any loop.
        acc = jnp.dot(w_ref[...], patch_ref[...],
                      preferred_element_type=jnp.float32)        # (C_outc, HWp)
        acc = acc + b_ref[...].astype(jnp.float32)

        # 4) Drop the padded columns of every output row (static lane slices),
        #    then fuse the channel concat: a single lane-dense (C_out, HW) store.
        rows = [acc[:, h * Wp + P:h * Wp + P + W] for h in range(H)]
        conv = jnp.concatenate(rows, axis=-1)                    # (C_outc, HW)
        o_ref[0] = jnp.concatenate(
            [x.astype(jnp.float32), conv], axis=0).astype(o_ref.dtype)

    return kernel


def multidilated_conv2d_block(x_nchw, weights, biases, kernel_size, dilations):
    """x_nchw: (N, C_in, H, W); weights: (n_dil, C_outc, C_in, k, k) (PyTorch
    OIHW per dilation); biases: (n_dil, C_outc).
    Returns (N, C_in + C_outc, H, W) = concat([x, sum_d conv_d(x)], axis=1)."""
    N, C_in, H, W = x_nchw.shape
    n_dil, C_outc, C_in_w, k, k2 = weights.shape
    assert C_in_w == C_in and k == k2 == kernel_size
    assert len(dilations) == n_dil
    C_out = C_in + C_outc
    HW = H * W

    pads = [d * (kernel_size - 1) // 2 for d in dilations]
    P = max(pads)
    Wp = W + 2 * P
    HWp = H * Wp

    # Static flat-index shift of each tap window (dilation, kh, kw) inside the
    # zero-padded image flattened row-major at width Wp.
    s0 = []
    for di, d in enumerate(dilations):
        for kh in range(k):
            for kw in range(k):
                s0.append((P - pads[di] + kh * d) * Wp + (kw * d - pads[di]))
    off = max(0, -min(s0))                       # front margin for negative shifts
    shifts = tuple(off + s for s in s0)
    data_off = off + P * Wp + P                  # flat index of pixel (0, 0)
    LF = max(max(shifts) + HWp, data_off + (H - 1) * Wp + W)
    K = n_dil * k * k * C_in

    # Stack weights once: (C_outc, K), K flattened in (dil, kh, kw, ci) order
    # to match the patch-matrix row order.  sum_d conv_d => biases add up.
    w_mat = jnp.transpose(weights, (1, 0, 3, 4, 2)).reshape(C_outc, K)
    w_mat = w_mat.astype(jnp.float32)
    b_col = jnp.sum(biases.astype(jnp.float32), axis=0).reshape(C_outc, 1)

    # Free contiguous reshape: stay in NCHW, flatten spatial dims so the kernel
    # sees a lane-dense (C, H*W) layout.  No transpose, no jnp.pad.
    x_flat = x_nchw.reshape(N, C_in, HW).astype(jnp.float32)

    kernel = _make_kernel(H, W, Wp, P, C_in, shifts, data_off)

    itemsize = 4
    cost = pl.CostEstimate(
        flops=2 * N * HWp * K * C_outc,
        transcendentals=0,
        bytes_accessed=itemsize * (N * C_in * HW + C_outc * K + C_outc
                                   + N * C_out * HW),
    )

    out_flat = pl.pallas_call(
        kernel,
        out_shape=jax.ShapeDtypeStruct((N, C_out, HW), jnp.float32),
        grid_spec=pltpu.PrefetchScalarGridSpec(
            num_scalar_prefetch=0,
            grid=(N,),
            in_specs=[
                pl.BlockSpec((1, C_in, HW), lambda n: (n, 0, 0)),
                pl.BlockSpec((C_outc, K), lambda n: (0, 0)),
                pl.BlockSpec((C_outc, 1), lambda n: (0, 0)),
            ],
            out_specs=pl.BlockSpec((1, C_out, HW), lambda n: (n, 0, 0)),
            scratch_shapes=[
                pltpu.VMEM((C_in, LF), jnp.float32),   # padded flat image
                pltpu.VMEM((K, HWp), jnp.float32),     # im2col patch matrix
            ],
        ),
        compiler_params=pltpu.CompilerParams(
            dimension_semantics=("parallel",)),
        cost_estimate=cost,
    )(x_flat, w_mat, b_col)

    # Free contiguous reshape back to NCHW; concat/transpose already fused.
    return out_flat.reshape(N, C_out, H, W)


def _reference(x_nchw, weights, biases, kernel_size, dilations):
    out = None
    for di, d in enumerate(dilations):
        pad = d * (kernel_size - 1) // 2
        o = jax.lax.conv_general_dilated(
            x_nchw, weights[di],
            window_strides=(1, 1),
            padding=[(pad, pad), (pad, pad)],
            rhs_dilation=(d, d),
            dimension_numbers=("NCHW", "OIHW", "NCHW"),
        ) + biases[di][None, :, None, None]
        out = o if out is None else out + o
    return jnp.concatenate([x_nchw, out], axis=1)


if __name__ == "__main__":
    # Module config: in_channels=4, out_channels=8, kernel_size=3,
    # dilation_factors=(1, 2)  => each conv outputs out_channels - in_channels = 4.
    N, C_in, H, W = 2, 4, 16, 16
    C_out = 8
    C_outc = C_out - C_in
    k = 3
    dilations = (1, 2)

    key = jax.random.PRNGKey(0)
    kx, kw, kb = jax.random.split(key, 3)
    x = jax.random.normal(kx, (N, C_in, H, W), dtype=jnp.float32)
    # Deterministic synthetic parameters (PyTorch OIHW weight layout per dilation).
    weights = 0.1 * jax.random.normal(
        kw, (len(dilations), C_outc, C_in, k, k), dtype=jnp.float32)
    biases = 0.1 * jax.random.normal(
        kb, (len(dilations), C_outc), dtype=jnp.float32)

    out = multidilated_conv2d_block(x, weights, biases, k, dilations)
    out = jax.block_until_ready(out)

    ref = _reference(x, weights, biases, k, dilations)
    assert out.shape == (N, C_out, H, W), out.shape
    assert jnp.allclose(out, ref, atol=1e-4, rtol=1e-4), float(
        jnp.max(jnp.abs(out - ref)))

    print("KERNEL_OK")
</pallas_src>

<mosaic_0001>
module attributes {stable_mosaic.version = 11 : i64} {
  func.func @kernel(%arg0: i32, %arg1: memref<1x4x256xf32, #tpu.memory_space<vmem>>, %arg2: memref<4x72xf32, #tpu.memory_space<vmem>>, %arg3: memref<4x1xf32, #tpu.memory_space<vmem>>, %arg4: memref<1x8x256xf32, #tpu.memory_space<vmem>>, %arg5: memref<4x404xf32, #tpu.memory_space<vmem>>, %arg6: memref<72x320xf32, #tpu.memory_space<vmem>>) attributes {dimension_semantics = [#tpu.dimension_semantics<parallel>], iteration_bounds = array<i64: 2>, scalar_prefetch = 0 : i64, scratch_operands = 2 : i64, tpu.core_type = #tpu.core_type<tc>, window_params = [{transform_indices = @transform_0, window_bounds = array<i64: 1, 4, 256>}, {pipeline_mode = #tpu.pipeline_mode<synchronous>, transform_indices = @transform_1, window_bounds = array<i64: 4, 72>}, {pipeline_mode = #tpu.pipeline_mode<synchronous>, transform_indices = @transform_2, window_bounds = array<i64: 4, 1>}, {transform_indices = @transform_3, window_bounds = array<i64: 1, 8, 256>}]} {
    %c0 = arith.constant 0 : index
    %c0_0 = arith.constant 0 : index
    %c0_1 = arith.constant 0 : index
    %0 = vector.load %arg1[%c0, %c0_0, %c0_1] : memref<1x4x256xf32, #tpu.memory_space<vmem>>, vector<1x4x256xf32>
    %1 = vector.shape_cast %0 : vector<1x4x256xf32> to vector<4x256xf32>
    %cst = arith.constant 0.000000e+00 : f32
    %2 = vector.broadcast %cst : f32 to vector<4x404xf32>
    %c0_2 = arith.constant 0 : index
    %c0_3 = arith.constant 0 : index
    %3 = vector.load %arg5[%c0_2, %c0_3] : memref<4x404xf32, #tpu.memory_space<vmem>>, vector<4x404xf32>
    tpu.vector_store %arg5[%c0_2, %c0_3], %2 {strides = array<i32>} : memref<4x404xf32, #tpu.memory_space<vmem>>, vector<4x404xf32>,
    %4 = vector.extract_strided_slice %1 {offsets = [0, 0], sizes = [4, 16], strides = [1, 1]} : vector<4x256xf32> to vector<4x16xf32>
    %c0_4 = arith.constant 0 : index
    %c44 = arith.constant 44 : index
    %5 = vector.load %arg5[%c0_4, %c44] : memref<4x404xf32, #tpu.memory_space<vmem>>, vector<4x16xf32>
    tpu.vector_store %arg5[%c0_4, %c44], %4 {strides = array<i32>} : memref<4x404xf32, #tpu.memory_space<vmem>>, vector<4x16xf32>,
    %6 = vector.extract_strided_slice %1 {offsets = [0, 16], sizes = [4, 16], strides = [1, 1]} : vector<4x256xf32> to vector<4x16xf32>
    %c0_5 = arith.constant 0 : index
    %c64 = arith.constant 64 : index
    %7 = vector.load %arg5[%c0_5, %c64] : memref<4x404xf32, #tpu.memory_space<vmem>>, vector<4x16xf32>
    tpu.vector_store %arg5[%c0_5, %c64], %6 {strides = array<i32>} : memref<4x404xf32, #tpu.memory_space<vmem>>, vector<4x16xf32>,
    %8 = vector.extract_strided_slice %1 {offsets = [0, 32], sizes = [4, 16], strides = [1, 1]} : vector<4x256xf32> to vector<4x16xf32>
    %c0_6 = arith.constant 0 : index
    %c84 = arith.constant 84 : index
    %9 = vector.load %arg5[%c0_6, %c84] : memref<4x404xf32, #tpu.memory_space<vmem>>, vector<4x16xf32>
    tpu.vector_store %arg5[%c0_6, %c84], %8 {strides = array<i32>} : memref<4x404xf32, #tpu.memory_space<vmem>>, vector<4x16xf32>,
    %10 = vector.extract_strided_slice %1 {offsets = [0, 48], sizes = [4, 16], strides = [1, 1]} : vector<4x256xf32> to vector<4x16xf32>
    %c0_7 = arith.constant 0 : index
    %c104 = arith.constant 104 : index
    %11 = vector.load %arg5[%c0_7, %c104] : memref<4x404xf32, #tpu.memory_space<vmem>>, vector<4x16xf32>
    tpu.vector_store %arg5[%c0_7, %c104], %10 {strides = array<i32>} : memref<4x404xf32, #tpu.memory_space<vmem>>, vector<4x16xf32>,
    %12 = vector.extract_strided_slice %1 {offsets = [0, 64], sizes = [4, 16], strides = [1, 1]} : vector<4x256xf32> to vector<4x16xf32>
    %c0_8 = arith.constant 0 : index
    %c124 = arith.constant 124 : index
    %13 = vector.load %arg5[%c0_8, %c124] : memref<4x404xf32, #tpu.memory_space<vmem>>, vector<4x16xf32>
    tpu.vector_store %arg5[%c0_8, %c124], %12 {strides = array<i32>} : memref<4x404xf32, #tpu.memory_space<vmem>>, vector<4x16xf32>,
    %14 = vector.extract_strided_slice %1 {offsets = [0, 80], sizes = [4, 16], strides = [1, 1]} : vector<4x256xf32> to vector<4x16xf32>
    %c0_9 = arith.constant 0 : index
    %c144 = arith.constant 144 : index
    %15 = vector.load %arg5[%c0_9, %c144] : memref<4x404xf32, #tpu.memory_space<vmem>>, vector<4x16xf32>
    tpu.vector_store %arg5[%c0_9, %c144], %14 {strides = array<i32>} : memref<4x404xf32, #tpu.memory_space<vmem>>, vector<4x16xf32>,
    %16 = vector.extract_strided_slice %1 {offsets = [0, 96], sizes = [4, 16], strides = [1, 1]} : vector<4x256xf32> to vector<4x16xf32>
    %c0_10 = arith.constant 0 : index
    %c164 = arith.constant 164 : index
    %17 = vector.load %arg5[%c0_10, %c164] : memref<4x404xf32, #tpu.memory_space<vmem>>, vector<4x16xf32>
    tpu.vector_store %arg5[%c0_10, %c164], %16 {strides = array<i32>} : memref<4x404xf32, #tpu.memory_space<vmem>>, vector<4x16xf32>,
    %18 = vector.extract_strided_slice %1 {offsets = [0, 112], sizes = [4, 16], strides = [1, 1]} : vector<4x256xf32> to vector<4x16xf32>
    %c0_11 = arith.constant 0 : index
    %c184 = arith.constant 184 : index
    %19 = vector.load %arg5[%c0_11, %c184] : memref<4x404xf32, #tpu.memory_space<vmem>>, vector<4x16xf32>
    tpu.vector_store %arg5[%c0_11, %c184], %18 {strides = array<i32>} : memref<4x404xf32, #tpu.memory_space<vmem>>, vector<4x16xf32>,
    %20 = vector.extract_strided_slice %1 {offsets = [0, 128], sizes = [4, 16], strides = [1, 1]} : vector<4x256xf32> to vector<4x16xf32>
    %c0_12 = arith.constant 0 : index
    %c204 = arith.constant 204 : index
    %21 = vector.load %arg5[%c0_12, %c204] : memref<4x404xf32, #tpu.memory_space<vmem>>, vector<4x16xf32>
    tpu.vector_store %arg5[%c0_12, %c204], %20 {strides = array<i32>} : memref<4x404xf32, #tpu.memory_space<vmem>>, vector<4x16xf32>,
    %22 = vector.extract_strided_slice %1 {offsets = [0, 144], sizes = [4, 16], strides = [1, 1]} : vector<4x256xf32> to vector<4x16xf32>
    %c0_13 = arith.constant 0 : index
    %c224 = arith.constant 224 : index
    %23 = vector.load %arg5[%c0_13, %c224] : memref<4x404xf32, #tpu.memory_space<vmem>>, vector<4x16xf32>
    tpu.vector_store %arg5[%c0_13, %c224], %22 {strides = array<i32>} : memref<4x404xf32, #tpu.memory_space<vmem>>, vector<4x16xf32>,
    %24 = vector.extract_strided_slice %1 {offsets = [0, 160], sizes = [4, 16], strides = [1, 1]} : vector<4x256xf32> to vector<4x16xf32>
    %c0_14 = arith.constant 0 : index
    %c244 = arith.constant 244 : index
    %25 = vector.load %arg5[%c0_14, %c244] : memref<4x404xf32, #tpu.memory_space<vmem>>, vector<4x16xf32>
    tpu.vector_store %arg5[%c0_14, %c244], %24 {strides = array<i32>} : memref<4x404xf32, #tpu.memory_space<vmem>>, vector<4x16xf32>,
    %26 = vector.extract_strided_slice %1 {offsets = [0, 176], sizes = [4, 16], strides = [1, 1]} : vector<4x256xf32> to vector<4x16xf32>
    %c0_15 = arith.constant 0 : index
    %c264 = arith.constant 264 : index
    %27 = vector.load %arg5[%c0_15, %c264] : memref<4x404xf32, #tpu.memory_space<vmem>>, vector<4x16xf32>
    tpu.vector_store %arg5[%c0_15, %c264], %26 {strides = array<i32>} : memref<4x404xf32, #tpu.memory_space<vmem>>, vector<4x16xf32>,
    %28 = vector.extract_strided_slice %1 {offsets = [0, 192], sizes = [4, 16], strides = [1, 1]} : vector<4x256xf32> to vector<4x16xf32>
    %c0_16 = arith.constant 0 : index
    %c284 = arith.constant 284 : index
    %29 = vector.load %arg5[%c0_16, %c284] : memref<4x404xf32, #tpu.memory_space<vmem>>, vector<4x16xf32>
    tpu.vector_store %arg5[%c0_16, %c284], %28 {strides = array<i32>} : memref<4x404xf32, #tpu.memory_space<vmem>>, vector<4x16xf32>,
    %30 = vector.extract_strided_slice %1 {offsets = [0, 208], sizes = [4, 16], strides = [1, 1]} : vector<4x256xf32> to vector<4x16xf32>
    %c0_17 = arith.constant 0 : index
    %c304 = arith.constant 304 : index
    %31 = vector.load %arg5[%c0_17, %c304] : memref<4x404xf32, #tpu.memory_space<vmem>>, vector<4x16xf32>
    tpu.vector_store %arg5[%c0_17, %c304], %30 {strides = array<i32>} : memref<4x404xf32, #tpu.memory_space<vmem>>, vector<4x16xf32>,
    %32 = vector.extract_strided_slice %1 {offsets = [0, 224], sizes = [4, 16], strides = [1, 1]} : vector<4x256xf32> to vector<4x16xf32>
    %c0_18 = arith.constant 0 : index
    %c324 = arith.constant 324 : index
    %33 = vector.load %arg5[%c0_18, %c324] : memref<4x404xf32, #tpu.memory_space<vmem>>, vector<4x16xf32>
    tpu.vector_store %arg5[%c0_18, %c324], %32 {strides = array<i32>} : memref<4x404xf32, #tpu.memory_space<vmem>>, vector<4x16xf32>,
    %34 = vector.extract_strided_slice %1 {offsets = [0, 240], sizes = [4, 16], strides = [1, 1]} : vector<4x256xf32> to vector<4x16xf32>
    %c0_19 = arith.constant 0 : index
    %c344 = arith.constant 344 : index
    %35 = vector.load %arg5[%c0_19, %c344] : memref<4x404xf32, #tpu.memory_space<vmem>>, vector<4x16xf32>
    tpu.vector_store %arg5[%c0_19, %c344], %34 {strides = array<i32>} : memref<4x404xf32, #tpu.memory_space<vmem>>, vector<4x16xf32>,
    %c0_20 = arith.constant 0 : index
    %c21 = arith.constant 21 : index
    %36 = vector.load %arg5[%c0_20, %c21] : memref<4x404xf32, #tpu.memory_space<vmem>>, vector<4x320xf32>
    %c0_21 = arith.constant 0 : index
    %c0_22 = arith.constant 0 : index
    %37 = vector.load %arg6[%c0_21, %c0_22] : memref<72x320xf32, #tpu.memory_space<vmem>>, vector<4x320xf32>
    tpu.vector_store %arg6[%c0_21, %c0_22], %36 {strides = array<i32>} : memref<72x320xf32, #tpu.memory_space<vmem>>, vector<4x320xf32>,
    %c0_23 = arith.constant 0 : index
    %c22 = arith.constant 22 : index
    %38 = vector.load %arg5[%c0_23, %c22] : memref<4x404xf32, #tpu.memory_space<vmem>>, vector<4x320xf32>
    %c4 = arith.constant 4 : index
    %c0_24 = arith.constant 0 : index
    %39 = vector.load %arg6[%c4, %c0_24] : memref<72x320xf32, #tpu.memory_space<vmem>>, vector<4x320xf32>
    tpu.vector_store %arg6[%c4, %c0_24], %38 {strides = array<i32>} : memref<72x320xf32, #tpu.memory_space<vmem>>, vector<4x320xf32>,
    %c0_25 = arith.constant 0 : index
    %c23 = arith.constant 23 : index
    %40 = vector.load %arg5[%c0_25, %c23] : memref<4x404xf32, #tpu.memory_space<vmem>>, vector<4x320xf32>
    %c8 = arith.constant 8 : index
    %c0_26 = arith.constant 0 : index
    %41 = vector.load %arg6[%c8, %c0_26] : memref<72x320xf32, #tpu.memory_space<vmem>>, vector<4x320xf32>
    tpu.vector_store %arg6[%c8, %c0_26], %40 {strides = array<i32>} : memref<72x320xf32, #tpu.memory_space<vmem>>, vector<4x320xf32>,
    %c0_27 = arith.constant 0 : index
    %c41 = arith.constant 41 : index
    %42 = vector.load %arg5[%c0_27, %c41] : memref<4x404xf32, #tpu.memory_space<vmem>>, vector<4x320xf32>
    %c12 = arith.constant 12 : index
    %c0_28 = arith.constant 0 : index
    %43 = vector.load %arg6[%c12, %c0_28] : memref<72x320xf32, #tpu.memory_space<vmem>>, vector<4x320xf32>
    tpu.vector_store %arg6[%c12, %c0_28], %42 {strides = array<i32>} : memref<72x320xf32, #tpu.memory_space<vmem>>, vector<4x320xf32>,
    %c0_29 = arith.constant 0 : index
    %c42 = arith.constant 42 : index
    %44 = vector.load %arg5[%c0_29, %c42] : memref<4x404xf32, #tpu.memory_space<vmem>>, vector<4x320xf32>
    %c16 = arith.constant 16 : index
    %c0_30 = arith.constant 0 : index
    %45 = vector.load %arg6[%c16, %c0_30] : memref<72x320xf32, #tpu.memory_space<vmem>>, vector<4x320xf32>
    tpu.vector_store %arg6[%c16, %c0_30], %44 {strides = array<i32>} : memref<72x320xf32, #tpu.memory_space<vmem>>, vector<4x320xf32>,
    %c0_31 = arith.constant 0 : index
    %c43 = arith.constant 43 : index
    %46 = vector.load %arg5[%c0_31, %c43] : memref<4x404xf32, #tpu.memory_space<vmem>>, vector<4x320xf32>
    %c20 = arith.constant 20 : index
    %c0_32 = arith.constant 0 : index
    %47 = vector.load %arg6[%c20, %c0_32] : memref<72x320xf32, #tpu.memory_space<vmem>>, vector<4x320xf32>
    tpu.vector_store %arg6[%c20, %c0_32], %46 {strides = array<i32>} : memref<72x320xf32, #tpu.memory_space<vmem>>, vector<4x320xf32>,
    %c0_33 = arith.constant 0 : index
    %c61 = arith.constant 61 : index
    %48 = vector.load %arg5[%c0_33, %c61] : memref<4x404xf32, #tpu.memory_space<vmem>>, vector<4x320xf32>
    %c24 = arith.constant 24 : index
    %c0_34 = arith.constant 0 : index
    %49 = vector.load %arg6[%c24, %c0_34] : memref<72x320xf32, #tpu.memory_space<vmem>>, vector<4x320xf32>
    tpu.vector_store %arg6[%c24, %c0_34], %48 {strides = array<i32>} : memref<72x320xf32, #tpu.memory_space<vmem>>, vector<4x320xf32>,
    %c0_35 = arith.constant 0 : index
    %c62 = arith.constant 62 : index
    %50 = vector.load %arg5[%c0_35, %c62] : memref<4x404xf32, #tpu.memory_space<vmem>>, vector<4x320xf32>
    %c28 = arith.constant 28 : index
    %c0_36 = arith.constant 0 : index
    %51 = vector.load %arg6[%c28, %c0_36] : memref<72x320xf32, #tpu.memory_space<vmem>>, vector<4x320xf32>
    tpu.vector_store %arg6[%c28, %c0_36], %50 {strides = array<i32>} : memref<72x320xf32, #tpu.memory_space<vmem>>, vector<4x320xf32>,
    %c0_37 = arith.constant 0 : index
    %c63 = arith.constant 63 : index
    %52 = vector.load %arg5[%c0_37, %c63] : memref<4x404xf32, #tpu.memory_space<vmem>>, vector<4x320xf32>
    %c32 = arith.constant 32 : index
    %c0_38 = arith.constant 0 : index
    %53 = vector.load %arg6[%c32, %c0_38] : memref<72x320xf32, #tpu.memory_space<vmem>>, vector<4x320xf32>
    tpu.vector_store %arg6[%c32, %c0_38], %52 {strides = array<i32>} : memref<72x320xf32, #tpu.memory_space<vmem>>, vector<4x320xf32>,
    %c0_39 = arith.constant 0 : index
    %c0_40 = arith.constant 0 : index
    %54 = vector.load %arg5[%c0_39, %c0_40] : memref<4x404xf32, #tpu.memory_space<vmem>>, vector<4x320xf32>
    %c36 = arith.constant 36 : index
    %c0_41 = arith.constant 0 : index
    %55 = vector.load %arg6[%c36, %c0_41] : memref<72x320xf32, #tpu.memory_space<vmem>>, vector<4x320xf32>
    tpu.vector_store %arg6[%c36, %c0_41], %54 {strides = array<i32>} : memref<72x320xf32, #tpu.memory_space<vmem>>, vector<4x320xf32>,
    %c0_42 = arith.constant 0 : index
    %c2 = arith.constant 2 : index
    %56 = vector.load %arg5[%c0_42, %c2] : memref<4x404xf32, #tpu.memory_space<vmem>>, vector<4x320xf32>
    %c40 = arith.constant 40 : index
    %c0_43 = arith.constant 0 : index
    %57 = vector.load %arg6[%c40, %c0_43] : memref<72x320xf32, #tpu.memory_space<vmem>>, vector<4x320xf32>
    tpu.vector_store %arg6[%c40, %c0_43], %56 {strides = array<i32>} : memref<72x320xf32, #tpu.memory_space<vmem>>, vector<4x320xf32>,
    %c0_44 = arith.constant 0 : index
    %c4_45 = arith.constant 4 : index
    %58 = vector.load %arg5[%c0_44, %c4_45] : memref<4x404xf32, #tpu.memory_space<vmem>>, vector<4x320xf32>
    %c44_46 = arith.constant 44 : index
    %c0_47 = arith.constant 0 : index
    %59 = vector.load %arg6[%c44_46, %c0_47] : memref<72x320xf32, #tpu.memory_space<vmem>>, vector<4x320xf32>
    tpu.vector_store %arg6[%c44_46, %c0_47], %58 {strides = array<i32>} : memref<72x320xf32, #tpu.memory_space<vmem>>, vector<4x320xf32>,
    %c0_48 = arith.constant 0 : index
    %c40_49 = arith.constant 40 : index
    %60 = vector.load %arg5[%c0_48, %c40_49] : memref<4x404xf32, #tpu.memory_space<vmem>>, vector<4x320xf32>
    %c48 = arith.constant 48 : index
    %c0_50 = arith.constant 0 : index
    %61 = vector.load %arg6[%c48, %c0_50] : memref<72x320xf32, #tpu.memory_space<vmem>>, vector<4x320xf32>
    tpu.vector_store %arg6[%c48, %c0_50], %60 {strides = array<i32>} : memref<72x320xf32, #tpu.memory_space<vmem>>, vector<4x320xf32>,
    %c0_51 = arith.constant 0 : index
    %c42_52 = arith.constant 42 : index
    %62 = vector.load %arg5[%c0_51, %c42_52] : memref<4x404xf32, #tpu.memory_space<vmem>>, vector<4x320xf32>
    %c52 = arith.constant 52 : index
    %c0_53 = arith.constant 0 : index
    %63 = vector.load %arg6[%c52, %c0_53] : memref<72x320xf32, #tpu.memory_space<vmem>>, vector<4x320xf32>
    tpu.vector_store %arg6[%c52, %c0_53], %62 {strides = array<i32>} : memref<72x320xf32, #tpu.memory_space<vmem>>, vector<4x320xf32>,
    %c0_54 = arith.constant 0 : index
    %c44_55 = arith.constant 44 : index
    %64 = vector.load %arg5[%c0_54, %c44_55] : memref<4x404xf32, #tpu.memory_space<vmem>>, vector<4x320xf32>
    %c56 = arith.constant 56 : index
    %c0_56 = arith.constant 0 : index
    %65 = vector.load %arg6[%c56, %c0_56] : memref<72x320xf32, #tpu.memory_space<vmem>>, vector<4x320xf32>
    tpu.vector_store %arg6[%c56, %c0_56], %64 {strides = array<i32>} : memref<72x320xf32, #tpu.memory_space<vmem>>, vector<4x320xf32>,
    %c0_57 = arith.constant 0 : index
    %c80 = arith.constant 80 : index
    %66 = vector.load %arg5[%c0_57, %c80] : memref<4x404xf32, #tpu.memory_space<vmem>>, vector<4x320xf32>
    %c60 = arith.constant 60 : index
    %c0_58 = arith.constant 0 : index
    %67 = vector.load %arg6[%c60, %c0_58] : memref<72x320xf32, #tpu.memory_space<vmem>>, vector<4x320xf32>
    tpu.vector_store %arg6[%c60, %c0_58], %66 {strides = array<i32>} : memref<72x320xf32, #tpu.memory_space<vmem>>, vector<4x320xf32>,
    %c0_59 = arith.constant 0 : index
    %c82 = arith.constant 82 : index
    %68 = vector.load %arg5[%c0_59, %c82] : memref<4x404xf32, #tpu.memory_space<vmem>>, vector<4x320xf32>
    %c64_60 = arith.constant 64 : index
    %c0_61 = arith.constant 0 : index
    %69 = vector.load %arg6[%c64_60, %c0_61] : memref<72x320xf32, #tpu.memory_space<vmem>>, vector<4x320xf32>
    tpu.vector_store %arg6[%c64_60, %c0_61], %68 {strides = array<i32>} : memref<72x320xf32, #tpu.memory_space<vmem>>, vector<4x320xf32>,
    %c0_62 = arith.constant 0 : index
    %c84_63 = arith.constant 84 : index
    %70 = vector.load %arg5[%c0_62, %c84_63] : memref<4x404xf32, #tpu.memory_space<vmem>>, vector<4x320xf32>
    %c68 = arith.constant 68 : index
    %c0_64 = arith.constant 0 : index
    %71 = vector.load %arg6[%c68, %c0_64] : memref<72x320xf32, #tpu.memory_space<vmem>>, vector<4x320xf32>
    tpu.vector_store %arg6[%c68, %c0_64], %70 {strides = array<i32>} : memref<72x320xf32, #tpu.memory_space<vmem>>, vector<4x320xf32>,
    %c0_65 = arith.constant 0 : index
    %c0_66 = arith.constant 0 : index
    %72 = vector.load %arg2[%c0_65, %c0_66] : memref<4x72xf32, #tpu.memory_space<vmem>>, vector<4x72xf32>
    %c0_67 = arith.constant 0 : index
    %c0_68 = arith.constant 0 : index
    %73 = vector.load %arg6[%c0_67, %c0_68] : memref<72x320xf32, #tpu.memory_space<vmem>>, vector<72x320xf32>
    %cst_69 = arith.constant dense<0.000000e+00> : vector<4x320xf32>
    %74 = tpu.matmul %72, %73, %cst_69 {dimension_numbers = #tpu.dot_dimension_numbers<[1], [0], [0], [1], [0, 0, 1, 1], [], []>} : vector<4x72xf32>, vector<72x320xf32>, vector<4x320xf32> -> vector<4x320xf32>
    %c0_70 = arith.constant 0 : index
    %c0_71 = arith.constant 0 : index
    %75 = vector.load %arg3[%c0_70, %c0_71] : memref<4x1xf32, #tpu.memory_space<vmem>>, vector<4x1xf32>
    %76 = vector.broadcast %75 : vector<4x1xf32> to vector<4x320xf32>
    %77 = arith.addf %74, %76 : vector<4x320xf32>
    %78 = vector.extract_strided_slice %77 {offsets = [0, 2], sizes = [4, 16], strides = [1, 1]} : vector<4x320xf32> to vector<4x16xf32>
    %79 = vector.extract_strided_slice %77 {offsets = [0, 22], sizes = [4, 16], strides = [1, 1]} : vector<4x320xf32> to vector<4x16xf32>
    %80 = vector.extract_strided_slice %77 {offsets = [0, 42], sizes = [4, 16], strides = [1, 1]} : vector<4x320xf32> to vector<4x16xf32>
    %81 = vector.extract_strided_slice %77 {offsets = [0, 62], sizes = [4, 16], strides = [1, 1]} : vector<4x320xf32> to vector<4x16xf32>
    %82 = vector.extract_strided_slice %77 {offsets = [0, 82], sizes = [4, 16], strides = [1, 1]} : vector<4x320xf32> to vector<4x16xf32>
    %83 = vector.extract_strided_slice %77 {offsets = [0, 102], sizes = [4, 16], strides = [1, 1]} : vector<4x320xf32> to vector<4x16xf32>
    %84 = vector.extract_strided_slice %77 {offsets = [0, 122], sizes = [4, 16], strides = [1, 1]} : vector<4x320xf32> to vector<4x16xf32>
    %85 = vector.extract_strided_slice %77 {offsets = [0, 142], sizes = [4, 16], strides = [1, 1]} : vector<4x320xf32> to vector<4x16xf32>
    %86 = vector.extract_strided_slice %77 {offsets = [0, 162], sizes = [4, 16], strides = [1, 1]} : vector<4x320xf32> to vector<4x16xf32>
    %87 = vector.extract_strided_slice %77 {offsets = [0, 182], sizes = [4, 16], strides = [1, 1]} : vector<4x320xf32> to vector<4x16xf32>
    %88 = vector.extract_strided_slice %77 {offsets = [0, 202], sizes = [4, 16], strides = [1, 1]} : vector<4x320xf32> to vector<4x16xf32>
    %89 = vector.extract_strided_slice %77 {offsets = [0, 222], sizes = [4, 16], strides = [1, 1]} : vector<4x320xf32> to vector<4x16xf32>
    %90 = vector.extract_strided_slice %77 {offsets = [0, 242], sizes = [4, 16], strides = [1, 1]} : vector<4x320xf32> to vector<4x16xf32>
    %91 = vector.extract_strided_slice %77 {offsets = [0, 262], sizes = [4, 16], strides = [1, 1]} : vector<4x320xf32> to vector<4x16xf32>
    %92 = vector.extract_strided_slice %77 {offsets = [0, 282], sizes = [4, 16], strides = [1, 1]} : vector<4x320xf32> to vector<4x16xf32>
    %93 = vector.extract_strided_slice %77 {offsets = [0, 302], sizes = [4, 16], strides = [1, 1]} : vector<4x320xf32> to vector<4x16xf32>
    %94 = tpu.concatenate %78, %79, %80, %81, %82, %83, %84, %85, %86, %87, %88, %89, %90, %91, %92, %93 in 1 : vector<4x16xf32>, vector<4x16xf32>, vector<4x16xf32>, vector<4x16xf32>, vector<4x16xf32>, vector<4x16xf32>, vector<4x16xf32>, vector<4x16xf32>, vector<4x16xf32>, vector<4x16xf32>, vector<4x16xf32>, vector<4x16xf32>, vector<4x16xf32>, vector<4x16xf32>, vector<4x16xf32>, vector<4x16xf32> -> vector<4x256xf32>
    %95 = tpu.concatenate %1, %94 in 0 : vector<4x256xf32>, vector<4x256xf32> -> vector<8x256xf32>
    %c0_72 = arith.constant 0 : index
    %c0_73 = arith.constant 0 : index
    %c0_74 = arith.constant 0 : index
    %96 = vector.load %arg4[%c0_72, %c0_73, %c0_74] : memref<1x8x256xf32, #tpu.memory_space<vmem>>, vector<1x8x256xf32>
    %97 = vector.shape_cast %96 : vector<1x8x256xf32> to vector<8x256xf32>
    %98 = vector.shape_cast %95 : vector<8x256xf32> to vector<1x8x256xf32>
    tpu.vector_store %arg4[%c0_72, %c0_73, %c0_74], %98 {strides = array<i32>} : memref<1x8x256xf32, #tpu.memory_space<vmem>>, vector<1x8x256xf32>,
    return
  }
  func.func @transform_0(%arg0: i32) -> (i32, i32, i32) {
    %c0_i32 = arith.constant 0 : i32
    %c0_i32_0 = arith.constant 0 : i32
    %c0_i32_1 = arith.constant 0 : i32
    return %arg0, %c0_i32, %c0_i32_0 : i32, i32, i32
  }
  func.func @transform_1(%arg0: i32) -> (i32, i32) {
    %c0_i32 = arith.constant 0 : i32
    %c0_i32_0 = arith.constant 0 : i32
    %c0_i32_1 = arith.constant 0 : i32
    return %c0_i32, %c0_i32_0 : i32, i32
  }
  func.func @transform_2(%arg0: i32) -> (i32, i32) {
    %c0_i32 = arith.constant 0 : i32
    %c0_i32_0 = arith.constant 0 : i32
    %c0_i32_1 = arith.constant 0 : i32
    return %c0_i32, %c0_i32_0 : i32, i32
  }
  func.func @transform_3(%arg0: i32) -> (i32, i32, i32) {
    %c0_i32 = arith.constant 0 : i32
    %c0_i32_0 = arith.constant 0 : i32
    %c0_i32_1 = arith.constant 0 : i32
    return %arg0, %c0_i32, %c0_i32_0 : i32, i32, i32
  }
}

</mosaic_0001>

<bundles_post_ra>
// kernel: tpu_custom_call.1
= control target key start
LH: loop header
LB: loop body
LE: loop exit
PB: predicated region body
PF: predicated region fallthrough
CT: control target
= control target key end

     0   :  { %8 = vsyncpa [#allocation5], 0  ;;  %s1744_s0 = inlined_call_operand.hbm [shape: f32[2,4,256], index: 0, kind: input, shape index: {}]   ;;  %s1745_s1 = inlined_call_operand.vmem [shape: f32[4,72], index: 1, kind: input, shape index: {}]   ;;  %s1746_s2 = inlined_call_operand.vmem [shape: f32[4,1], index: 2, kind: input, shape index: {}]   ;;  %s1747_s3 = inlined_call_operand.hbm [shape: f32[2,8,256], index: 3, kind: output, shape index: {}]  }
   0x1   :  { %10 = vsyncpa [#allocation5 + $0x1], 0 }
   0x2   :  { %11 = vsyncpa [#allocation6], 0 }
   0x3   :  { %13 = vsyncpa [#allocation6 + $0x1], 0  ;;  %s1362_s12 = smov 0   ;;  %s1364_s13 = smov 0  }
   0x4   :  { %s1366_s14 = smov 0   ;;  %s1368_s15 = smov 0  }
   0x5 LB: > { %s1383_s16 = sadd.s32 4294967295, %s1294_s15   ;;  %s1018_s17 = sadd.s32 4294967294, %s1294_s15   ;;  %s1294_s15 = sphi %s1368_s15, %s1762_s15   ;;  %s1290_s14 = sphi %s1366_s14, %s1761_s14   ;;  %s1286_s13 = sphi %s1364_s13, %s1760_s13   ;;  %s1282_s12 = sphi %s1362_s12, %s1759_s12  }
   0x6   : > { %s1387_s18 = sadd.s32 1, %s1294_s15   ;;  %s26_s19 = sadd.s32 1, %s1290_s14 }
   0x7   : > { %s23_s20 = ssub.s32 %s1294_s15, %s1387_s18  ;;  %p33_p0 = scmp.ne.s32.totalorder %s1290_s14, %s1286_s13 }
   0x8   : > { %p24_p1 = scmp.eq.s32.totalorder %s23_s20, 0  ;;  %p34_p2 = scmp.eq.s32.totalorder %s1294_s15, 0 }
   0x9   : > { %p39_p3 = scmp.ne.s32.totalorder %s1286_s13, %s1282_s12  ;;  %p40_p4 = scmp.eq.s32.totalorder %s1383_s16, 0 }
   0xa   : > { %s1399_s21 = scalar_select %p24_p1, %s1290_s14, %s26_s19  }
   0xb   : > { %p1401_p5 = por %p34_p2, %p33_p0  ;;  %p1405_p6 = por %p40_p4, %p39_p3 }
   0xc   : > { %p105_p7 = scmp.eq.s32.totalorder %s1383_s16, 1  ;;  %p111_p8 = scmp.eq.s32.totalorder %s1018_s17, 1 }
   0xd   : > { %p1107_p10 = scmp.lt.s32.totalorder %s1294_s15, 2  ;;  %s137_s26 = sand.u32 1, %s1290_s14  }
   0xe   : > { %p1412_p11 = por %p105_p7, %p33_p0  ;;  %p1416_p12 = por %p111_p8, %p39_p3 }
   0xf   : > { %s1034_s27 = sshll.u32 %s1294_s15, 7  ;;  %s1021_s28 = sshll.u32 %s137_s26, 3 }
  0x10   : > { %s1751_s24 = scalar_select %p1412_p11, 1, 0 }
  0x11   : > { %s1752_s25 = scalar_select %p1416_p12, 1, 0 }
  0x12   : > { %s1425_s4 = scalar_lea.hbm %s1744_s0, %s1034_s27  ;;  %s141_s5 = scalar_lea.vmem [#allocation4], %s1021_s28 }
  0x13   : > { %s149_s6 = sshll.u32 %s141_s5, 4  ;;  %p1429_p13 = pnand %p1107_p10, %p1401_p5  ;;  %s1433_s6 = int_to_ptr.vmem [resolvable:$true] %s149_s6 }
  0x14   : > { %s138_s8 = scalar_lea.sflag [#allocation5], %s137_s26  ;;  %s1198_s9 = scalar_lea.hbm %s1425_s4, 128 }
  0x15   : > { %p1199_p2 = scmp.ne.s32.totalorder %s1425_s4, %s1198_s9  ;;  %p1200_p3 = pneg %p1429_p13 }
  0x16   : > { %s1203_s17 = scalar_lea.hbm %s1744_s0, 256  ;;  %p1204_p5 = scmp.lt.u32.totalorder %s1425_s4, %s1744_s0 }
  0x17   : > { %p1201_p4 = pnand %p1200_p3, %p1199_p2  ;;  %p1205_p8 = scmp.lt.u32.totalorder %s1203_s17, %s1198_s9 }
  0x18   : > { %p1207_p9 = scmp.lt.u32.totalorder %s1198_s9, %s1425_s4 }
  0x19   : > { %p1202_p7 = pneg %p1201_p4  ;;  %p1206_p10 = por %p1205_p8, %p1204_p5 }
  0x1b   : > { %p1208_p0 = por %p1207_p9, %p1206_p10 }
  0x1d   : > { %p1209_p1 = pnand %p1208_p0, %p1202_p7 }
  0x1f   : > { %1212 = shalt.err (!%p1209_p1)
}
  0x20   : > { %s1213_s22 = scalar_lea.vmem %s1433_s6, 128  ;;  %s1296_s26 = smov [#allocation4]  }
  0x21   : > { %p1214_p2 = scmp.ne.s32.totalorder %s1433_s6, %s1213_s22  ;;  %s1218_s27 = sshll.u32 %s1296_s26, 4  ;;  %s1219_s27 = int_to_ptr.vmem [resolvable:$false] %s1218_s27 }
  0x22   : > { %s1220_s28 = scalar_lea.vmem %s1219_s27, 256  ;;  %p1221_p11 = scmp.lt.s32.totalorder %s1433_s6, %s1219_s27 }
  0x23   : > { %p1216_p4 = pnand %p1214_p2, %p1200_p3  ;;  %p1222_p5 = scmp.lt.s32.totalorder %s1220_s28, %s1213_s22 }
  0x25   : > { %p1217_p12 = pneg %p1216_p4  ;;  %p1223_p8 = por %p1222_p5, %p1221_p11 }
  0x27   : > { %p1224_p9 = pnand %p1223_p8, %p1217_p12 }
  0x29   : > { %1227 = shalt.err (!%p1224_p9)
}
  0x2a   : > { %1102 = dma.hbm_to_vmem [thread:$0]  (!%p1429_p13), %s1425_s4, 128, %s1433_s6, %s138_s8  }
  0x2b   : > { %p1754_p0 = scmp.lt.s32.totalorder %s1294_s15, 3  ;;  %p1755_p1 = scmp.ge.s32.totalorder %s1294_s15, 1 }
  0x2d   : > { %p155_p3 = pnand %p1755_p1, %p1754_p0 }
  0x2e   : > { %s1467_s29 = sand.u32 (!%p155_p3), 1, %s1286_s13  }
  0x2f   : > { %158 = sbr.rel (%p155_p3) target bundleno = 816 (0x330), region = 32  ;;  %s1025_s30 = sshll.u32 (!%p155_p3), %s1467_s29, 3 }
  0x30   : > { %s161_s5 = scalar_lea.sflag (!%p155_p3), [#allocation5], %s1467_s29  ;;  %s1471_s9 = scalar_lea.vmem (!%p155_p3), [#allocation4], %s1025_s30 }
  0x36   : > { %1273 = dma.done.wait (%p1405_p6), %s161_s5, 128  }
  0x37   : > { %1275 = vsyncadd (%p1405_p6), %s161_s5, 4294967168  ;;  %v1297_v0 = vmov 0.0   ;;  %v1480_v1 = vld [vmem:[%s1471_s9] sm:$0xff]  ;;  %s1298_s4 = smov 60   ;;  %s1299_s6 = smov 44   ;;  %vm189_vm0 = vcmask 1043456  }
  0x38   : > { %188 = vst [vmem:[#allocation2] sm:$0xff] %v1297_v0  ;;  %766 = vmatprep.mubr.f32.mxu0 %v1297_v0  ;;  %214 = vrot.lane.b32.xlu1 %v1480_v1, %s1298_s4  ;;  %s1300_s7 = smov 52   ;;  %s1301_s23 = smov 48   ;;  %vm190_vm1 = vcmask 162820   ;;  %vm197_vm3 = vcmask 486752   ;;  %vm202_vm4 = vcmask 650752  }
  0x39   : > { %194 = vrot.lane.b32.xlu0 %v1480_v1, %s1299_s6  ;;  %vm191_vm2 = vmor %vm190_vm1, %vm189_vm0  ;;  %s1302_s8 = smov 64   ;;  %s1303_s10 = smov 56   ;;  %vm207_vm5 = vcmask 814752   ;;  %vm220_vm6 = vcmask 1044448   ;;  %vm221_vm7 = vcmask 97284   ;;  %vm217_vm8 = vcmask 490496  }
  0x3a   : > { %192 = vst.msk [vmem:[#allocation2 + $0x8] sm:$0xff] %vm191_vm2, %v1297_v0  ;;  %s1304_s11 = smov 68   ;;  %s1305_s17 = smov 76   ;;  %vm212_vm9 = vcmask 978752   ;;  %vm222_vm10 = vmor %vm221_vm7, %vm220_vm6  ;;  %vm227_vm11 = vcmask 257152   ;;  %vm232_vm12 = vcmask 421152  }
  0x3b   : > { %s1306_s19 = smov 72   ;;  %s1307_s20 = smov 80   ;;  %vm242_vm13 = vcmask 621568   ;;  %vm237_vm14 = vcmask 585152   ;;  %vm245_vm15 = vcmask 749152   ;;  %vm250_vm1 = vcmask 654336  }
  0x3c   : > { %204 = vrot.lane.b32.xlu1 %v1480_v1, %s1300_s7  ;;  %s1308_s22 = smov 84   ;;  %s1309_s26 = smov 88   ;;  %vm253_vm2 = vcmask 913152   ;;  %vm269_vm7 = vcmask 191552   ;;  %v1325_v43 = vmov 0.0|0.0   ;;  %v1328_v53 = vmov 0  }
  0x3d   : > { %199 = vrot.lane.b32.xlu0 %v1480_v1, %s1301_s23  ;;  %s1310_s27 = smov 92   ;;  %s1311_s28 = smov 96   ;;  %1083 = vmatprep.subr.bf16.mxu1 %v1325_v43  ;;  %v692_v54 = vld [vmem:[%s1746_s2] sm:$0xf] }
  0x3e   : > { %s1312_s30 = smov 100   ;;  %s1313_s5 = smov 104   ;;  %1185 = vset.pattern.permute.xlu0 %v1328_v53 }
  0x3f   : > { %s1314_s4 = smov 126   ;;  %s1315_s7 = smov 106  }
  0x40   : > { %224 = vrot.lane.b32.xlu1 %v1480_v1, %s1302_s8  ;;  %s1316_s8 = smov 86   ;;  %p1756_p11 = scmp.ne.s32.totalorder %s1751_s24, 0 }
  0x41   : > { %209 = vrot.lane.b32.xlu0 %v1480_v1, %s1303_s10  ;;  %s1317_s10 = smov 87  }
  0x44   : > { %229 = vrot.lane.b32.xlu1 %v1480_v1, %s1304_s11  ;;  %s1318_s11 = smov 107  }
  0x45   : > { %239 = vrot.lane.b32.xlu0 %v1480_v1, %s1305_s17  ;;  %s1319_s17 = smov 105  }
  0x48   : > { %234 = vrot.lane.b32.xlu1 %v1480_v1, %s1306_s19  ;;  %s1320_s19 = smov 85  }
  0x49   : > { %247 = vrot.lane.b32.xlu0 %v1480_v1, %s1307_s20  ;;  %s1321_s20 = smov 66  }
  0x4c   : > { %265 = vrot.lane.b32.xlu1 %v1480_v1, %s1309_s26 }
  0x4d   : > { %255 = vrot.lane.b32.xlu0 %v1480_v1, %s1308_s22 }
  0x50   : > { %277 = vrot.lane.b32.xlu1 %v1480_v1, %s1311_s28  ;;  %s1323_s28 = smov 124  }
  0x51   : > { %271 = vrot.lane.b32.xlu0 %v1480_v1, %s1310_s27  ;;  %s1322_s27 = smov 67  }
  0x54   : > { %289 = vrot.lane.b32.xlu1 %v1480_v1, %s1313_s5  ;;  %s1326_s5 = smov 46  }
  0x55   : > { %283 = vrot.lane.b32.xlu0 %v1480_v1, %s1312_s30  ;;  %s1324_s30 = smov 65  }
  0xaa   : > { %v215_v2 = vpop.permute.xlu1 %214 }
  0xab   : > { %v195_v3 = vpop.permute.xlu0 %194  ;;  %v216_v6 = vrot.slane %v215_v2, 4 }
  0xac   : > { %198 = vst.msk [vmem:[#allocation2] sm:$0xf] %vm197_vm3, %v195_v3  ;;  %vm261_vm3 = vcmask 1044384  }
  0xad   : > { %v218_v9 = vsel %vm217_vm8, %v216_v6, %v215_v2  ;;  %vm275_vm8 = vcmask 355552  }
  0xae   : > { %v205_v4 = vpop.permute.xlu1 %204 }
  0xaf   : > { %v200_v5 = vpop.permute.xlu0 %199 }
  0xb0   : > { %203 = vst.msk [vmem:[#allocation2] sm:$0xf] %vm202_vm4, %v200_v5  ;;  %vm262_vm4 = vcmask 31748  }
  0xb1   : > { %208 = vst.msk [vmem:[#allocation2] sm:$0xf] %vm207_vm5, %v205_v4  ;;  %vm258_vm5 = vcmask 687104   ;;  %vm263_vm6 = vmor %vm262_vm4, %vm261_vm3  ;;  %vm452_vm3 = vcmask 539648   ;;  %vm544_vm4 = vcmask 719872  }
  0xb2   : > { %v225_v7 = vpop.permute.xlu1 %224 }
  0xb3   : > { %v210_v8 = vpop.permute.xlu0 %209 }
  0xb4   : > { %213 = vst.msk [vmem:[#allocation2] sm:$0xf] %vm212_vm9, %v210_v8  ;;  %vm281_vm9 = vcmask 519552  }
  0xb5   : > { %223 = vst.msk [vmem:[#allocation2] sm:$0xff] %vm222_vm10, %v218_v9  ;;  %vm287_vm10 = vcmask 683552  }
  0xb6   : > { %228 = vst.msk [vmem:[#allocation2 + $0x4] sm:$0xf] %vm227_vm11, %v225_v7  ;;  %v230_v10 = vpop.permute.xlu1 %229  ;;  %vm293_vm11 = vcmask 847552  }
  0xb7   : > { %v240_v11 = vpop.permute.xlu0 %239  ;;  %233 = vst.msk [vmem:[#allocation2 + $0x4] sm:$0xf] %vm232_vm12, %v230_v10  ;;  %vm336_vm12 = vcmask 523268  }
  0xb8   : > { %v241_v12 = vrot.slane %v240_v11, 4 }
  0xba   : > { %v235_v13 = vpop.permute.xlu1 %234  ;;  %v243_v15 = vsel %vm242_vm13, %v240_v11, %v241_v12  ;;  %vm1327_vm13 = vmmov 0  }
  0xbb   : > { %v248_v14 = vpop.permute.xlu0 %247  ;;  %238 = vst.msk [vmem:[#allocation2 + $0x4] sm:$0xf] %vm237_vm14, %v235_v13  ;;  %1064 = vmatprep.mubr.msk.f32.mxu1 %vm1327_vm13, %v1297_v0  ;;  %vm328_vm14 = vcmask 867328   ;;  %vm503_vm13 = vcmask 1031168  }
  0xbc   : > { %v249_v16 = vrot.slane %v248_v14, 4  ;;  %246 = vst.msk [vmem:[#allocation2 + $0x4] sm:$0xf] %vm245_vm15, %v243_v15  ;;  %vm370_vm15 = vcmask 711680  }
  0xbe   : > { %v251_v17 = vsel %vm250_vm1, %v248_v14, %v249_v16  ;;  %v266_v19 = vpop.permute.xlu1 %265 }
  0xbf   : > { %254 = vst.msk [vmem:[#allocation2 + $0x4] sm:$0xf] %vm253_vm2, %v251_v17  ;;  %v256_v18 = vpop.permute.xlu0 %255  ;;  %v267_v21 = vrot.slane %v266_v19, 4  ;;  %vm411_vm2 = vcmask 695296  }
  0xc0   : > { %v257_v20 = vrot.slane %v256_v18, 4 }
  0xc2   : > { %v259_v22 = vsel %vm258_vm5, %v256_v18, %v257_v20  ;;  %v278_v24 = vpop.permute.xlu1 %277 }
  0xc3   : > { %264 = vst.msk [vmem:[#allocation2 + $0x4] sm:$0xff] %vm263_vm6, %v259_v22  ;;  %v272_v23 = vpop.permute.xlu0 %271  ;;  %v279_v26 = vrot.slane %v278_v24, 4  ;;  %vm306_vm6 = vcmask 875520  }
  0xc4   : > { %270 = vst.msk [vmem:[#allocation2 + $0x8] sm:$0xf] %vm269_vm7, %v267_v21  ;;  %v273_v25 = vrot.slane %v272_v23, 4  ;;  %vm314_vm7 = vcmask 519168  }
  0xc6   : > { %276 = vst.msk [vmem:[#allocation2 + $0x8] sm:$0xf] %vm275_vm8, %v273_v25  ;;  %v290_v28 = vpop.permute.xlu1 %289  ;;  %vm349_vm8 = vcmask 859136  }
  0xc7   : > { %282 = vst.msk [vmem:[#allocation2 + $0x8] sm:$0xf] %vm281_vm9, %v279_v26  ;;  %v284_v27 = vpop.permute.xlu0 %283  ;;  %v291_v30 = vrot.slane %v290_v28, 4  ;;  %vm390_vm9 = vcmask 703488  }
  0xc8   : > { %v285_v29 = vrot.slane %v284_v27, 4 }
  0xca   : > { %v1506_v31 = vld [vmem:[#allocation2] sm:$0xff]  ;;  %288 = vst.msk [vmem:[#allocation2 + $0x8] sm:$0xf] %vm287_vm10, %v285_v29  ;;  %vm431_vm10 = vcmask 547840  }
  0xcb   : > { %497 = vrot.lane.b32.xlu1 %v1506_v31, %s1314_s4  ;;  %324 = vrot.lane.b32.xlu0 %v1506_v31, %s1315_s7  ;;  %v1514_v32 = vcombine.low %v1506_v31, %v1506_v31  ;;  %294 = vst.msk [vmem:[#allocation2 + $0x8] sm:$0xf] %vm293_vm11, %v291_v30  ;;  %490 = vst [vmem:[#allocation3 + $0x68] sm:$0xf0] %v1506_v31  ;;  %v496_v34 = vcombine.high %v1506_v31, %v1506_v31  ;;  %vm472_vm11 = vcmask 531456  }
  0xcd   : > { %489 = vst [vmem:[#allocation3 + $0x60] sm:$0xf0] %v1514_v32 }
  0xcf   : > { %561 = vrot.lane.b32.xlu1 %v1506_v31, %s1316_s8  ;;  %366 = vrot.lane.b32.xlu0 %v1506_v31, %s1317_s10 }
  0xd2   : > { %v1188_v33 = vld [vmem:[#allocation2 + $0x8] ss:$0 sps:$4 sm:$0xff]  }
  0xd3   : > { %600 = vrot.lane.b32.xlu1 %v1506_v31, %s1301_s23  ;;  %300 = vrot.lane.b32.xlu0 %v1506_v31, %s1318_s11  ;;  %491 = vst.msk [vmem:[#allocation3 + $0x70] sm:$0xf0] %vm336_vm12, %v1188_v33  ;;  %v296_v35 = vld [vmem:[#allocation2 + $0x8] sm:$0xf] }
  0xd4   : > { %v339_v36 = vld [vmem:[#allocation2 + $0x8] sm:$0xf] }
  0xd5   : > { %v380_v37 = vld [vmem:[#allocation2 + $0x8] sm:$0xf] }
  0xd6   : > { %v421_v38 = vld [vmem:[#allocation2 + $0x8] sm:$0xf] }
  0xd7   : > { %538 = vrot.lane.b32.xlu1 %v1506_v31, %s1309_s26  ;;  %343 = vrot.lane.b32.xlu0 %v1506_v31, %s1319_s17  ;;  %v462_v39 = vld [vmem:[#allocation2 + $0x8] sm:$0xf] }
  0xd8   : > { %v493_v40 = vld [vmem:[#allocation2 + $0x8] sm:$0xf] }
  0xd9   : > { %v593_v41 = vld [vmem:[#allocation2 + $0x8] sm:$0xff] }
  0xda   : > { %v1190_v42 = vld [vmem:[#allocation2 + $0x8] ss:$0 sps:$4 sm:$0xff]   ;;  %v597_v51 = vcombine.low %v593_v41, %v593_v41  ;;  %v621_v52 = vcombine.high %v593_v41, %v593_v41 }
  0xdb   : > { %578 = vrot.lane.b32.xlu1 %v1506_v31, %s1308_s22  ;;  %407 = vrot.lane.b32.xlu0 %v1506_v31, %s1320_s19  ;;  %v1191_v44 = vld [vmem:[#allocation2 + $0x8] ss:$0 sps:$4 sm:$0xff]  }
  0xdc   : > { %v1192_v45 = vld [vmem:[#allocation2 + $0x8] ss:$0 sps:$4 sm:$0xff]  }
  0xdd   : > { %v534_v46 = vld [vmem:[#allocation2 + $0x8] sm:$0xf] }
  0xde   : > { %v1193_v47 = vld [vmem:[#allocation2 + $0x8] ss:$0 sps:$4 sm:$0xff]  }
  0xdf   : > { %322 = vrot.lane.b32.xlu1 %v1514_v32, %s1315_s7  ;;  %448 = vrot.lane.b32.xlu0 %v1506_v31, %s1321_s20  ;;  %v574_v48 = vld [vmem:[#allocation2 + $0x8] sm:$0xf] }
  0xe0   : > { %v1194_v49 = vld [vmem:[#allocation2 + $0x8] ss:$0 sps:$4 sm:$0xff]  }
  0xe1   : > { %v1195_v50 = vld [vmem:[#allocation2 + $0x8] ss:$0 sps:$4 sm:$0xff]  }
  0xe3   : > { %364 = vrot.lane.b32.xlu1 %v1514_v32, %s1317_s10  ;;  %384 = vrot.lane.b32.xlu0 %v1506_v31, %s1316_s8 }
  0xe7   : > { %405 = vrot.lane.b32.xlu1 %v1514_v32, %s1320_s19  ;;  %425 = vrot.lane.b32.xlu0 %v1506_v31, %s1322_s27 }
  0xeb   : > { %446 = vrot.lane.b32.xlu1 %v1514_v32, %s1321_s20  ;;  %520 = vrot.lane.b32.xlu0 %v1506_v31, %s1323_s28 }
  0xef   : > { %540 = vrot.lane.b32.xlu1 %v496_v34, %s1309_s26  ;;  %466 = vrot.lane.b32.xlu0 %v1506_v31, %s1324_s30 }
  0xf3   : > { %580 = vrot.lane.b32.xlu1 %v496_v34, %s1308_s22  ;;  %302 = vrot.lane.b32.xlu0 %v496_v34, %s1318_s11 }
  0xf7   : > { %345 = vrot.lane.b32.xlu0 %v496_v34, %s1319_s17  ;;  %304 = vrot.lane.b32.xlu1 %v296_v35, %s1318_s11  ;;  %s1330_s11 = smov 78  }
  0xfb   : > { %386 = vrot.lane.b32.xlu0 %v496_v34, %s1316_s8  ;;  %347 = vrot.lane.b32.xlu1 %v339_v36, %s1319_s17  ;;  %s1331_s17 = smov 70  }
  0xff   : > { %427 = vrot.lane.b32.xlu0 %v496_v34, %s1322_s27  ;;  %388 = vrot.lane.b32.xlu1 %v380_v37, %s1316_s8 }
 0x103   : > { %468 = vrot.lane.b32.xlu0 %v496_v34, %s1324_s30  ;;  %429 = vrot.lane.b32.xlu1 %v421_v38, %s1322_s27  ;;  %s1333_s27 = smov 114  }
 0x107   : > { %499 = vrot.lane.b32.xlu0 %v496_v34, %s1314_s4  ;;  %470 = vrot.lane.b32.xlu1 %v462_v39, %s1324_s30  ;;  %s1335_s30 = smov 122  }
 0x10b   : > { %518 = vrot.lane.b32.xlu0 %v1514_v32, %s1323_s28  ;;  %501 = vrot.lane.b32.xlu1 %v493_v40, %s1314_s4 }
 0x10f   : > { %559 = vrot.lane.b32.xlu0 %v1514_v32, %s1316_s8  ;;  %604 = vrot.lane.b32.xlu1 %v593_v41, %s1301_s23 }
 0x113   : > { %598 = vrot.lane.b32.xlu0 %v1514_v32, %s1301_s23  ;;  %326 = vrot.lane.b32.xlu1 %v1190_v42, %s1315_s7 }
 0x117   : > { %624 = vrot.lane.b32.xlu0 %v496_v34, %s1326_s5  ;;  %368 = vrot.lane.b32.xlu1 %v1191_v44, %s1317_s10  ;;  %s1329_s10 = smov 74  }
 0x11b   : > { %542 = vrot.lane.b32.xlu0 %v534_v46, %s1309_s26  ;;  %409 = vrot.lane.b32.xlu1 %v1192_v45, %s1320_s19  ;;  %s1332_s19 = smov 118   ;;  %s1340_s26 = smov 82  }
 0x11f   : > { %582 = vrot.lane.b32.xlu0 %v574_v48, %s1308_s22  ;;  %450 = vrot.lane.b32.xlu1 %v1193_v47, %s1321_s20  ;;  %s1338_s22 = smov 90  }
 0x123   : > { %563 = vrot.lane.b32.xlu0 %v1194_v49, %s1316_s8  ;;  %522 = vrot.lane.b32.xlu1 %v1195_v50, %s1323_s28  ;;  %s1334_s28 = smov 110  }
 0x127   : > { %602 = vrot.lane.b32.xlu0 %v597_v51, %s1301_s23  ;;  %626 = vrot.lane.b32.xlu1 %v593_v41, %s1326_s5  ;;  %s1337_s23 = smov 94  }
 0x12b   : > { %648 = vrot.lane.b32.xlu0 %v1506_v31, %s1299_s6  ;;  %646 = vrot.lane.b32.xlu1 %v1514_v32, %s1299_s6 }
 0x12f   : > { %622 = vrot.lane.b32.xlu0 %v1506_v31, %s1326_s5  ;;  %650 = vrot.lane.b32.xlu1 %v597_v51, %s1299_s6 }
 0x133   : > { %628 = vrot.lane.b32.xlu0 %v621_v52, %s1326_s5  ;;  %652 = vrot.lane.b32.xlu1 %v593_v41, %s1299_s6  ;;  %s1336_s5 = smov 102   ;;  %s1339_s6 = smov 98  }
 0x137   : > { %695 = vperm.xlu0 %1185, %v692_v54  }
 0x13d   : > { %v1585_v55 = vpop.permute.xlu1 %497  ;;  %v1587_v56 = vpop.permute.xlu0 %324 }
 0x141   : > { %v1589_v57 = vpop.permute.xlu1 %561  ;;  %v1591_v58 = vpop.permute.xlu0 %366 }
 0x145   : > { %v1593_v59 = vpop.permute.xlu1 %600  ;;  %v301_v60 = vpop.permute.xlu0 %300 }
 0x149   : > { %v539_v61 = vpop.permute.xlu1 %538  ;;  %v344_v62 = vpop.permute.xlu0 %343 }
 0x14d   : > { %v579_v63 = vpop.permute.xlu1 %578  ;;  %v1595_v2 = vpop.permute.xlu0 %407 }
 0x151   : > { %v323_v3 = vpop.permute.xlu1 %322  ;;  %v1597_v4 = vpop.permute.xlu0 %448 }
 0x152   : > { %v329_v5 = vsel %vm328_vm14, %v323_v3, %v1587_v56 }
 0x153   : > { %334 = vst [vmem:[#allocation3] sm:$0xf0] %v329_v5 }
 0x155   : > { %v365_v6 = vpop.permute.xlu1 %364  ;;  %v385_v7 = vpop.permute.xlu0 %384 }
 0x156   : > { %v371_v8 = vsel %vm370_vm15, %v365_v6, %v1591_v58 }
 0x157   : > { %376 = vst [vmem:[#allocation3 + $0x18] sm:$0xf0] %v371_v8 }
 0x159   : > { %v406_v9 = vpop.permute.xlu1 %405  ;;  %v426_v10 = vpop.permute.xlu0 %425 }
 0x15a   : > { %v412_v11 = vsel %vm411_vm2, %v406_v9, %v1595_v2 }
 0x15b   : > { %417 = vst [vmem:[#allocation3 + $0x30] sm:$0xf0] %v412_v11 }
 0x15d   : > { %v447_v12 = vpop.permute.xlu1 %446  ;;  %v1605_v13 = vpop.permute.xlu0 %520 }
 0x15e   : > { %v453_v14 = vsel %vm452_vm3, %v447_v12, %v1597_v4 }
 0x15f   : > { %458 = vst [vmem:[#allocation3 + $0x48] sm:$0xf0] %v453_v14 }
 0x161   : > { %v1609_v15 = vpop.permute.xlu1 %540  ;;  %v467_v16 = vpop.permute.xlu0 %466 }
 0x162   : > { %v545_v17 = vsel %vm544_vm4, %v539_v61, %v1609_v15 }
 0x163   : > { %550 = vst [vmem:[#allocation3 + $0x90] sm:$0xf] %v545_v17 }
 0x165   : > { %v1613_v18 = vpop.permute.xlu1 %580  ;;  %v303_v19 = vpop.permute.xlu0 %302 }
 0x166   : > { %v584_v20 = vsel %vm258_vm5, %v579_v63, %v1613_v18  ;;  %v307_v21 = vsel %vm306_vm6, %v301_v60, %v303_v19 }
 0x167   : > { %589 = vst [vmem:[#allocation3 + $0xa8] sm:$0xf] %v584_v20  ;;  %312 = vst [vmem:[#allocation3] sm:$0xf] %v307_v21 }
 0x169   : > { %v305_v22 = vpop.permute.xlu1 %304  ;;  %v346_v23 = vpop.permute.xlu0 %345 }
 0x16a   : > { %v308_v24 = vsel %vm306_vm6, %v303_v19, %v305_v22  ;;  %315 = vst.msk [vmem:[#allocation3 + $0x10] sm:$0xf] %vm314_vm7, %v305_v22  ;;  %v350_v25 = vsel %vm349_vm8, %v344_v62, %v346_v23  ;;  %vm524_vm6 = vcmask 1014784  }
 0x16b   : > { %313 = vst [vmem:[#allocation3 + $0x8] sm:$0xf] %v308_v24  ;;  %355 = vst [vmem:[#allocation3 + $0x18] sm:$0xf] %v350_v25 }
 0x16d   : > { %v348_v26 = vpop.permute.xlu1 %347  ;;  %v387_v27 = vpop.permute.xlu0 %386 }
 0x16e   : > { %v351_v28 = vsel %vm349_vm8, %v346_v23, %v348_v26  ;;  %357 = vst.msk [vmem:[#allocation3 + $0x28] sm:$0xf] %vm314_vm7, %v348_v26  ;;  %v391_v29 = vsel %vm390_vm9, %v385_v7, %v387_v27  ;;  %vm606_vm8 = vcmask 392192   ;;  %v665_v14 = vld [vmem:[#allocation3] sm:$0xff] }
 0x16f   : > { %356 = vst [vmem:[#allocation3 + $0x20] sm:$0xf] %v351_v28  ;;  %396 = vst [vmem:[#allocation3 + $0x30] sm:$0xf] %v391_v29 }
 0x171   : > { %v389_v30 = vpop.permute.xlu1 %388  ;;  %v428_v31 = vpop.permute.xlu0 %427 }
 0x172   : > { %v392_v32 = vsel %vm390_vm9, %v387_v27, %v389_v30  ;;  %398 = vst.msk [vmem:[#allocation3 + $0x40] sm:$0xf] %vm314_vm7, %v389_v30  ;;  %v432_v33 = vsel %vm431_vm10, %v426_v10, %v428_v31  ;;  %v668_v7 = vld [vmem:[#allocation3 + $0x18] sm:$0xff] }
 0x173   : > { %397 = vst [vmem:[#allocation3 + $0x38] sm:$0xf] %v392_v32  ;;  %437 = vst [vmem:[#allocation3 + $0x48] sm:$0xf] %v432_v33 }
 0x175   : > { %v430_v34 = vpop.permute.xlu1 %429  ;;  %v469_v35 = vpop.permute.xlu0 %468 }
 0x176   : > { %v433_v36 = vsel %vm431_vm10, %v428_v31, %v430_v34  ;;  %439 = vst.msk [vmem:[#allocation3 + $0x58] sm:$0xf] %vm314_vm7, %v430_v34  ;;  %v473_v37 = vsel %vm472_vm11, %v467_v16, %v469_v35  ;;  %v671_v29 = vld [vmem:[#allocation3 + $0x30] sm:$0xff]  ;;  %vm910_vm10 = vcmask 785408  }
 0x177   : > { %438 = vst [vmem:[#allocation3 + $0x50] sm:$0xf] %v433_v36  ;;  %478 = vst [vmem:[#allocation3 + $0x60] sm:$0xf] %v473_v37 }
 0x179   : > { %v471_v38 = vpop.permute.xlu1 %470  ;;  %v500_v39 = vpop.permute.xlu0 %499 }
 0x17a   : > { %v474_v40 = vsel %vm472_vm11, %v469_v35, %v471_v38  ;;  %480 = vst.msk [vmem:[#allocation3 + $0x70] sm:$0xf] %vm314_vm7, %v471_v38  ;;  %v504_v41 = vsel %vm503_vm13, %v1585_v55, %v500_v39  ;;  %v674_v23 = vld [vmem:[#allocation3 + $0x48] sm:$0xff] }
 0x17b   : > { %479 = vst [vmem:[#allocation3 + $0x68] sm:$0xf] %v474_v40  ;;  %509 = vst [vmem:[#allocation3 + $0x78] sm:$0xf] %v504_v41  ;;  %v1073_v30 = vpack.c.bf16 %v674_v23, %v671_v29 }
 0x17d   : > { %v502_v42 = vpop.permute.xlu1 %501  ;;  %v519_v44 = vpop.permute.xlu0 %518 }
 0x17e   : > { %v505_v45 = vsel %vm503_vm13, %v500_v39, %v502_v42  ;;  %511 = vst.msk [vmem:[#allocation3 + $0x88] sm:$0xf] %vm314_vm7, %v502_v42  ;;  %v525_v46 = vsel %vm524_vm6, %v519_v44, %v1605_v13  ;;  %v677_v40 = vld [vmem:[#allocation3 + $0x60] sm:$0xff] }
 0x17f   : > { %510 = vst [vmem:[#allocation3 + $0x80] sm:$0xf] %v505_v45  ;;  %530 = vst [vmem:[#allocation3 + $0x78] sm:$0xf0] %v525_v46 }
 0x181   : > { %v1628_v47 = vpop.permute.xlu1 %604  ;;  %v560_v48 = vpop.permute.xlu0 %559 }
 0x182   : > { %v565_v49 = vsel %vm390_vm9, %v560_v48, %v1589_v57  ;;  %v678_v37 = vld [vmem:[#allocation3 + $0x68] sm:$0xff] }
 0x183   : > { %570 = vst [vmem:[#allocation3 + $0x90] sm:$0xf0] %v565_v49 }
 0x185   : > { %v327_v50 = vpop.permute.xlu1 %326  ;;  %v599_v51 = vpop.permute.xlu0 %598 }
 0x186   : > { %v330_v52 = vsel %vm328_vm14, %v1587_v56, %v327_v50  ;;  %337 = vst.msk [vmem:[#allocation3 + $0x10] sm:$0xf0] %vm336_vm12, %v327_v50  ;;  %v607_v53 = vsel %vm606_vm8, %v599_v51, %v1593_v59  ;;  %vm654_vm14 = vcmask 359424   ;;  %v680_v34 = vld [vmem:[#allocation3 + $0x78] sm:$0xff] }
 0x187   : > { %335 = vst [vmem:[#allocation3 + $0x8] sm:$0xf0] %v330_v52  ;;  %613 = vst [vmem:[#allocation3 + $0xa8] sm:$0xf0] %v607_v53  ;;  %v1077_v41 = vpack.c.bf16 %v680_v34, %v677_v40 }
 0x189   : > { %v369_v54 = vpop.permute.xlu1 %368  ;;  %v1637_v55 = vpop.permute.xlu0 %624 }
 0x18a   : > { %v372_v60 = vsel %vm370_vm15, %v1591_v58, %v369_v54  ;;  %378 = vst.msk [vmem:[#allocation3 + $0x28] sm:$0xf0] %vm336_vm12, %v369_v54  ;;  %v683_v54 = vld [vmem:[#allocation3 + $0x90] sm:$0xff]  ;;  %vm698_vm15 = vcmask 588800  }
 0x18b   : > { %377 = vst [vmem:[#allocation3 + $0x20] sm:$0xf0] %v372_v60 }
 0x18d   : > { %v410_v61 = vpop.permute.xlu1 %409  ;;  %v543_v62 = vpop.permute.xlu0 %542  ;;  %v667_v58 = vld [vmem:[#allocation3 + $0x10] sm:$0xff] }
 0x18e   : > { %v413_v56 = vsel %vm411_vm2, %v1595_v2, %v410_v61  ;;  %419 = vst.msk [vmem:[#allocation3 + $0x40] sm:$0xf0] %vm336_vm12, %v410_v61  ;;  %v546_v63 = vsel %vm544_vm4, %v1609_v15, %v543_v62  ;;  %v666_v10 = vld [vmem:[#allocation3 + $0x8] sm:$0xff]  ;;  %v1069_v15 = vpack.c.bf16 %v668_v7, %v665_v14  ;;  %vm904_vm2 = vcmask 261120  }
 0x18f   : > { %552 = vst.msk [vmem:[#allocation3 + $0xa0] sm:$0xf] %vm314_vm7, %v543_v62  ;;  %418 = vst [vmem:[#allocation3 + $0x38] sm:$0xf0] %v413_v56  ;;  %v686_v46 = vld [vmem:[#allocation3 + $0xa8] sm:$0xff]  ;;  %vm907_vm4 = vcmask 523264  }
 0x190   : > { %551 = vst [vmem:[#allocation3 + $0x98] sm:$0xf] %v546_v63  ;;  %v1081_v60 = vpack.c.bf16 %v686_v46, %v683_v54  ;;  %v1197_v46 = vld [vmem:[%s1471_s9] sm:$0xff]  ;;  %s1341_s9 = smov [#allocation7]  }
 0x191   : > { %v451_v3 = vpop.permute.xlu1 %450  ;;  %v583_v5 = vpop.permute.xlu0 %582  ;;  %v670_v6 = vld [vmem:[#allocation3 + $0x28] sm:$0xff] }
 0x192   : > { %v454_v8 = vsel %vm452_vm3, %v1597_v4, %v451_v3  ;;  %460 = vst.msk [vmem:[#allocation3 + $0x58] sm:$0xf0] %vm336_vm12, %v451_v3  ;;  %v585_v2 = vsel %vm258_vm5, %v1613_v18, %v583_v5  ;;  %v1084_v9 = vpack.c.bf16 %v670_v6, %v667_v58  ;;  %v669_v11 = vld [vmem:[#allocation3 + $0x20] sm:$0xff]  ;;  %vm630_vm5 = vcmask 375808   ;;  %v664_v3 = vld [vmem:[%s1745_s1] sm:$0xf] }
 0x193   : > { %591 = vst.msk [vmem:[#allocation3 + $0xb8] sm:$0xf] %vm314_vm7, %v583_v5  ;;  %459 = vst [vmem:[#allocation3 + $0x50] sm:$0xf0] %v454_v8  ;;  %v1067_v12 = vpack.c.bf16 %v669_v11, %v666_v10  ;;  %vm890_vm3 = vcmask 637952  }
 0x194   : > { %590 = vst [vmem:[#allocation3 + $0xb0] sm:$0xf] %v585_v2  ;;  %1085 = vmatpush3.bf16.msra.mxu1 %v1084_v9 }
 0x195   : > { %v523_v16 = vpop.permute.xlu1 %522  ;;  %1068 = vmatprep.subr.bf16.mxu0 %v1067_v12  ;;  %v564_v17 = vpop.permute.xlu0 %563  ;;  %1086 = vmatprep.subr.bf16.mxu1 %v1325_v43  ;;  %v673_v21 = vld [vmem:[#allocation3 + $0x40] sm:$0xff] }
 0x196   : > { %v526_v4 = vsel %vm524_vm6, %v1605_v13, %v523_v16  ;;  %532 = vst.msk [vmem:[#allocation3 + $0x88] sm:$0xf0] %vm336_vm12, %v523_v16  ;;  %v566_v18 = vsel %vm390_vm9, %v1589_v57, %v564_v17  ;;  %572 = vst.msk [vmem:[#allocation3 + $0xa0] sm:$0xf0] %vm336_vm12, %v564_v17  ;;  %1070 = vmatpush1.bf16.msra.mxu0 %v1069_v15  ;;  %v672_v26 = vld [vmem:[#allocation3 + $0x38] sm:$0xff]  ;;  %vm912_vm9 = vcmask 916480  }
 0x197   : > { %531 = vst [vmem:[#allocation3 + $0x80] sm:$0xf0] %v526_v4  ;;  %571 = vst [vmem:[#allocation3 + $0x98] sm:$0xf0] %v566_v18 }
 0x199   : > { %v627_v19 = vpop.permute.xlu1 %626  ;;  %v603_v20 = vpop.permute.xlu0 %602  ;;  %v676_v22 = vld [vmem:[#allocation3 + $0x58] sm:$0xff] }
 0x19a   : > { %v632_v24 = vsel %vm630_vm5, %v1637_v55, %v627_v19  ;;  %v608_v13 = vsel %vm606_vm8, %v1593_v59, %v603_v20  ;;  %v609_v57 = vsel %vm606_vm8, %v603_v20, %v1628_v47  ;;  %v1087_v25 = vpack.c.bf16 %v676_v22, %v673_v21  ;;  %v675_v27 = vld [vmem:[#allocation3 + $0x50] sm:$0xff] }
 0x19b   : > { %638 = vst [vmem:[#allocation3 + $0xc8] sm:$0xf] %v632_v24  ;;  %614 = vst [vmem:[#allocation3 + $0xb0] sm:$0xf0] %v608_v13  ;;  %v1071_v28 = vpack.c.bf16 %v675_v27, %v672_v26  ;;  %v679_v59 = vld [vmem:[#allocation3 + $0x70] sm:$0xff] }
 0x19c   : > { %615 = vst.msk [vmem:[#allocation3 + $0xb8] sm:$0xf0] %vm336_vm12, %v609_v57  ;;  %1088 = vmatpush3.bf16.msra.mxu1 %v1087_v25 }
 0x19d   : > { %v647_v31 = vpop.permute.xlu1 %646  ;;  %1072 = vmatprep.subr.bf16.mxu0 %v1071_v28  ;;  %v649_v32 = vpop.permute.xlu0 %648  ;;  %1089 = vmatprep.subr.bf16.mxu1 %v1325_v43  ;;  %v682_v33 = vld [vmem:[#allocation3 + $0x88] sm:$0xff]  ;;  %v685_v45 = vld [vmem:[#allocation3 + $0xa0] sm:$0xff] }
 0x19e   : > { %v655_v35 = vsel %vm654_vm14, %v647_v31, %v649_v32  ;;  %1074 = vmatpush1.bf16.msra.mxu0 %v1073_v30  ;;  %v1090_v36 = vpack.c.bf16 %v682_v33, %v679_v59  ;;  %v681_v38 = vld [vmem:[#allocation3 + $0x80] sm:$0xff]  ;;  %v684_v49 = vld [vmem:[#allocation3 + $0x98] sm:$0xff] }
 0x19f   : > { %661 = vst [vmem:[#allocation3 + $0xc0] sm:$0xf0] %v655_v35  ;;  %v1075_v39 = vpack.c.bf16 %v681_v38, %v678_v37 }
 0x1a0   : > { %1091 = vmatpush3.bf16.msra.mxu1 %v1090_v36 }
 0x1a1   : > { %v651_v42 = vpop.permute.xlu1 %650  ;;  %1076 = vmatprep.subr.bf16.mxu0 %v1075_v39  ;;  %v623_v44 = vpop.permute.xlu0 %622  ;;  %1092 = vmatprep.subr.bf16.mxu1 %v1325_v43 }
 0x1a2   : > { %v656_v47 = vsel %vm654_vm14, %v649_v32, %v651_v42  ;;  %v631_v48 = vsel %vm630_vm5, %v623_v44, %v1637_v55  ;;  %1078 = vmatpush1.bf16.msra.mxu0 %v1077_v41  ;;  %v687_v50 = vld [vmem:[#allocation3 + $0xb0] sm:$0xff] }
 0x1a3   : > { %v688_v51 = vld [vmem:[#allocation3 + $0xb8] sm:$0xff]  ;;  %662 = vst [vmem:[#allocation3 + $0xc8] sm:$0xf0] %v656_v47  ;;  %637 = vst [vmem:[#allocation3 + $0xc0] sm:$0xf] %v631_v48  ;;  %v1079_v52 = vpack.c.bf16 %v687_v50, %v684_v49 }
 0x1a4   : > { %v1093_v53 = vpack.c.bf16 %v688_v51, %v685_v45 }
 0x1a5   : > { %v653_v61 = vpop.permute.xlu1 %652  ;;  %1080 = vmatprep.subr.bf16.mxu0 %v1079_v52  ;;  %v629_v43 = vpop.permute.xlu0 %628 }
 0x1a6   : > { %1094 = vmatpush3.bf16.msra.mxu1 %v1093_v53  ;;  %v657_v62 = vsel %vm654_vm14, %v651_v42, %v653_v61  ;;  %v633_v56 = vsel %vm630_vm5, %v627_v19, %v629_v43  ;;  %1082 = vmatpush1.bf16.msra.mxu0 %v1081_v60  ;;  %v921_v42 = vcombine.high %v1480_v1, %v1480_v1 }
 0x1a7   : > { %1062 = vmatprep.subr.mxu1 %v1297_v0  ;;  %663 = vst.msk [vmem:[#allocation3 + $0xd0] sm:$0xf0] %vm336_vm12, %v657_v62  ;;  %vm902_vm12 = vcmask 130048  }
 0x1a8   : > { %639 = vst.msk [vmem:[#allocation3 + $0xd0] sm:$0xf] %vm314_vm7, %v633_v56  ;;  %vm867_vm7 = vcmask 834560  }
 0x1aa   : > { %v690_v55 = vld [vmem:[#allocation3 + $0xc8] sm:$0xff]  ;;  %v689_v63 = vld [vmem:[#allocation3 + $0xc0] sm:$0xff] }
 0x1ab   : > { %718 = vmatprep.subr.mxu0 %v690_v55 }
 0x1ac   : > { %719 = vmatpush1.msra.mxu0 %v689_v63 }
 0x1ad   : > { %1027 = vmatmul.mubr.msk.f32.vlgmr.msra.gmra.mrb[0].mxu0 %vm698_vm15, %v664_v3 }
 0x1af   : > { %v691_v5 = vld [vmem:[#allocation3 + $0xd0] sm:$0xff] }
 0x1b0   : > { %1063 = vmatpush3.msra.mxu1 %v691_v5 }
 0x1b1   : > { %1065 = vmatmul.mubr.msk.f32.vlgmr.msra.gmra.mrb[0].mxu1 %vm698_vm15, %v664_v3 }
 0x1b6   : > { %v696_v0 = vpop.permute.xlu0 %695 }
 0x280   : > { %v768_v58 = vpop.f32.mrb[0].mxu0 }
 0x281   : > { %v770_v6 = vpop.f32.mrb[1].mxu0  ;;  %v769_v9 = vadd.f32 %v768_v58, %v696_v0 }
 0x282   : > { %v771_v10 = vadd.f32 %v770_v6, %v696_v0 }
 0x284   : > { %v839_v7 = vpop.f32.mrb[0].mxu1 }
 0x285   : > { %v840_v8 = vadd.f32 %v839_v7, %v696_v0  ;;  %v1066_v2 = vpop.f32.mrb[1].mxu1 }
 0x287   : > { %893 = vrot.lane.b32.xlu0 %v840_v8, %s1329_s10  ;;  %888 = vrot.lane.b32.xlu1 %v840_v8, %s1330_s11 }
 0x28b   : > { %896 = vrot.lane.b32.xlu1 %v840_v8, %s1331_s17  ;;  %850 = vrot.lane.b32.xlu0 %v769_v9, %s1332_s19 }
 0x28f   : > { %853 = vrot.lane.b32.xlu0 %v769_v9, %s1333_s27  ;;  %844 = vrot.lane.b32.xlu1 %v769_v9, %s1314_s4  ;;  %s1026_s4 = sshll.u32 %s1467_s29, 4  ;;  %s1232_s27 = sshll.u32 %s1341_s9, 4  ;;  %s1233_s27 = int_to_ptr.vmem [resolvable:$false] %s1232_s27 }
 0x293   : > { %856 = vrot.lane.b32.xlu0 %v769_v9, %s1334_s28  ;;  %847 = vrot.lane.b32.xlu1 %v769_v9, %s1335_s30  ;;  %s1234_s28 = scalar_lea.vmem %s1233_s27, 512 }
 0x297   : > { %863 = vrot.lane.b32.xlu0 %v769_v9, %s1336_s5  ;;  %859 = vrot.lane.b32.xlu1 %v769_v9, %s1315_s7  ;;  %s1035_s7 = sshll.u32 %s1383_s16, 8  ;;  %s934_s16 = scalar_lea.sflag [#allocation6], %s1467_s29 }
 0x298   : > { %s1699_s17 = scalar_lea.hbm %s1747_s3, %s1035_s7 }
 0x29b   : > { %873 = vrot.lane.b32.xlu0 %v771_v10, %s1337_s23  ;;  %876 = vrot.lane.b32.xlu1 %v771_v10, %s1338_s22 }
 0x29f   : > { %886 = vrot.lane.b32.xlu0 %v771_v10, %s1330_s11  ;;  %879 = vrot.lane.b32.xlu1 %v771_v10, %s1316_s8  ;;  %s186_s8 = scalar_lea.vmem [#allocation7], %s1026_s4 }
 0x2a3   : > { %870 = vrot.lane.b32.xlu0 %v771_v10, %s1339_s6  ;;  %882 = vrot.lane.b32.xlu1 %v771_v10, %s1340_s26 }
 0x2a7   : > { %865 = vrot.lane.b32.xlu1 %v771_v10, %s1336_s5 }
 0x2ab   : > { %899 = vrot.lane.b32.xlu1 %v840_v8, %s1321_s20  ;;  %s948_s20 = sshll.u32 %s186_s8, 4  ;;  %s1701_s20 = int_to_ptr.vmem [resolvable:$true] %s948_s20 }
 0x2ac   : > { %s1228_s19 = scalar_lea.vmem %s1701_s20, 256  ;;  %p1235_p7 = scmp.lt.s32.totalorder %s1701_s20, %s1233_s27 }
 0x2ad   : > { %p1229_p6 = scmp.ne.s32.totalorder %s1701_s20, %s1228_s19  ;;  %p1236_p10 = scmp.lt.s32.totalorder %s1234_s28, %s1228_s19 }
 0x2af   : > { %p1230_p12 = pnand %p1229_p6, %p1756_p11  ;;  %p1237_p2 = por %p1236_p10, %p1235_p7 }
 0x2b1   : > { %p1231_p13 = pneg %p1230_p12 }
 0x2b3   : > { %p1238_p4 = pnand %p1237_p2, %p1231_p13 }
 0x2f9   : > { %v894_v11 = vpop.permute.xlu0 %893  ;;  %v889_v12 = vpop.permute.xlu1 %888 }
 0x2fd   : > { %v897_v14 = vpop.permute.xlu1 %896  ;;  %v851_v15 = vpop.permute.xlu0 %850 }
 0x301   : > { %v854_v16 = vpop.permute.xlu0 %853  ;;  %v845_v17 = vpop.permute.xlu1 %844 }
 0x305   : > { %v857_v4 = vpop.permute.xlu0 %856  ;;  %v848_v18 = vpop.permute.xlu1 %847 }
 0x306   : > { %v903_v23 = vsel %vm902_vm12, %v845_v17, %v848_v18 }
 0x307   : > { %v905_v24 = vsel %vm904_vm2, %v903_v23, %v851_v15 }
 0x308   : > { %v906_v25 = vsel %vm606_vm8, %v905_v24, %v854_v16 }
 0x309   : > { %v864_v19 = vpop.permute.xlu0 %863  ;;  %v860_v20 = vpop.permute.xlu1 %859  ;;  %v908_v31 = vsel %vm907_vm4, %v906_v25, %v857_v4 }
 0x30a   : > { %v909_v33 = vsel %vm250_vm1, %v908_v31, %v860_v20 }
 0x30d   : > { %v874_v21 = vpop.permute.xlu0 %873  ;;  %v877_v22 = vpop.permute.xlu1 %876 }
 0x30e   : > { %v914_v26 = vsel %vm902_vm12, %v874_v21, %v877_v22 }
 0x311   : > { %v880_v13 = vpop.permute.xlu1 %879  ;;  %v887_v57 = vpop.permute.xlu0 %886 }
 0x312   : > { %v915_v27 = vsel %vm904_vm2, %v914_v26, %v880_v13  ;;  %v891_v29 = vsel %vm890_vm3, %v887_v57, %v889_v12 }
 0x315   : > { %v883_v28 = vpop.permute.xlu1 %882  ;;  %v871_v36 = vpop.permute.xlu0 %870 }
 0x316   : > { %v916_v30 = vsel %vm606_vm8, %v915_v27, %v883_v28 }
 0x317   : > { %v917_v32 = vsel %vm907_vm4, %v916_v30, %v891_v29 }
 0x318   : > { %v918_v35 = vsel %vm250_vm1, %v917_v32, %v894_v11 }
 0x319   : > { %v866_v59 = vpop.permute.xlu1 %865  ;;  %v919_v39 = vsel %vm910_vm10, %v918_v35, %v897_v14 }
 0x31a   : > { %v868_v34 = vsel %vm867_vm7, %v864_v19, %v866_v59 }
 0x31b   : > { %v911_v37 = vsel %vm910_vm10, %v909_v33, %v868_v34 }
 0x31c   : > { %v913_v38 = vsel %vm912_vm9, %v911_v37, %v871_v36 }
 0x31d   : > { %v925_v40 = vrot.slane %v913_v38, 4  ;;  %v900_v41 = vpop.permute.xlu1 %899 }
 0x31e   : > { %v920_v44 = vsel %vm912_vm9, %v919_v39, %v900_v41 }
 0x31f   : > { %v926_v45 = vrot.slane %v920_v44, 4  ;;  %v929_v47 = vsel %vm189_vm0, %v1197_v46, %v925_v40 }
 0x320   : > { %931 = vst [vmem:[%s186_s8] sm:$0xff] %v929_v47 }
 0x321   : > { %v930_v1 = vsel %vm189_vm0, %v921_v42, %v926_v45 }
 0x322   : > { %932 = vst [vmem:[%s186_s8 + $0x8] sm:$0xff] %v930_v1 }
 0x323   : > { %1241 = shalt.err (!%p1238_p4)
}
 0x324   : > { %s1242_s29 = scalar_lea.hbm %s1699_s17, 256  ;;  %s1246_s23 = scalar_lea.hbm %s1747_s3, 512 }
 0x325   : > { %p1243_p5 = scmp.ne.s32.totalorder %s1699_s17, %s1242_s29  ;;  %p1247_p0 = scmp.lt.u32.totalorder %s1699_s17, %s1747_s3 }
 0x326   : > { %p1248_p1 = scmp.lt.u32.totalorder %s1246_s23, %s1242_s29  ;;  %p1250_p6 = scmp.lt.u32.totalorder %s1242_s29, %s1699_s17 }
 0x327   : > { %p1244_p8 = pnand %p1243_p5, %p1756_p11 }
 0x328   : > { %p1249_p3 = por %p1248_p1, %p1247_p0 }
 0x329   : > { %p1245_p9 = pneg %p1244_p8 }
 0x32a   : > { %p1251_p12 = por %p1250_p6, %p1249_p3 }
 0x32c   : > { %p1252_p13 = pnand %p1251_p12, %p1245_p9 }
 0x32e   : > { %1255 = shalt.err (!%p1252_p13)
}
 0x32f   : > { %1097 = dma.vmem_to_hbm [thread:$0]  (%p1756_p11), %s1701_s20, 256, %s1699_s17, %s934_s16  }
 0x330 PF: > { %s960_s26 = sand.u32 1, %s1282_s12   ;;  %p1757_p7 = scmp.ne.s32.totalorder %s1752_s25, 0 }
 0x331   : > { %p1758_p10 = scmp.ge.s32.totalorder %s1294_s15, 2  ;;  %s961_s4 = scalar_lea.sflag [#allocation6], %s960_s26 }
 0x333   : > { %p1104_p2 = pnand %p1758_p10, %p1757_p7 }
 0x335   : > { %1277 = dma.done.wait (!%p1104_p2), %s961_s4, 256  }
 0x336   : > { %1279 = vsyncadd (!%p1104_p2), %s961_s4, 4294967040  ;;  %p16_p4 = scmp.ge.s32.totalorder %s1387_s18, 4   ;;  %s1759_s12 = smov %s1286_s13 }
 0x337   : > { %s1760_s13 = smov %s1290_s14  ;;  %s1761_s14 = smov %s1399_s21 }
 0x338   : > { %s1762_s15 = smov %s1387_s18  ;;  %18 = sbr.rel (!%p16_p4) target bundleno = 5 (0x5), region = 77 }
 0x33f   :  { %966 = vsyncpa [#allocation5], 1 }
 0x340   :  { %968 = vsyncpa [#allocation5 + $0x1], 1 }
 0x341   :  { %969 = vsyncpa [#allocation6], 1 }
 0x342   :  { %971 = vsyncpa [#allocation6 + $0x1], 1 }

</bundles_post_ra>
